<compile_context>
chip_gen: v5e
topology: v5e:2x2
jax: 0.10.0
libtpu: 0.0.40
codegen_flags: <defaults>
</compile_context>

<pallas_src>
import jax
import jax.numpy as jnp
import numpy as np
from jax.experimental import pallas as pl
from jax.experimental.pallas import tpu as pltpu


def _round_down(v, m):
    return (v // m) * m


def _make_focal_kernel(gamma: float, n_classes: int, tile: int,
                       hw_true: int, needs_mask: bool):
    gamma = float(gamma)
    gamma_is_int = gamma.is_integer() and gamma >= 0

    def focal_loss_kernel(x_ref, t_ref, a_ref, out_ref):
        logits = x_ref[0].astype(jnp.float32)      # (C, T)  classes on sublanes
        tgt = t_ref[0]                             # (1, T)  int32
        alpha = a_ref[...].astype(jnp.float32)     # (C, 1)

        # Numerically stable softmax pieces along the (small) class axis.
        m = jnp.max(logits, axis=0, keepdims=True)                    # (1, T)
        shifted = logits - m                                          # (C, T)
        sumexp = jnp.sum(jnp.exp(shifted), axis=0, keepdims=True)     # (1, T)
        lse = jnp.log(sumexp)                                         # (1, T)

        # Gather log p_t and alpha_t with a class-axis one-hot select.
        cls = jax.lax.broadcasted_iota(jnp.int32, (n_classes, tile), 0)
        onehot = cls == tgt                                           # (C, T)
        # NOTE: out-of-range targets (e.g. ignore labels) give an all-false
        # one-hot -> zero loss for that pixel, but the pixel is still counted
        # in the size_average denominator (PyTorch's gather would error).

        # log-softmax is never materialized: gather from `shifted`, subtract
        # lse on the (1, T) row only.
        logpt = jnp.sum(jnp.where(onehot, shifted, 0.0),
                        axis=0, keepdims=True) - lse                  # (1, T)
        pt = jnp.exp(logpt)
        at = jnp.sum(jnp.where(onehot, alpha, 0.0),
                     axis=0, keepdims=True)                           # (1, T)
        logpt = logpt * at

        if gamma_is_int and int(gamma) == 0:
            loss = -logpt
        else:
            w = 1.0 - pt
            if gamma_is_int:
                focal = w                     # VALU multiply chain, no EUP pow
                for _ in range(int(gamma) - 1):
                    focal = focal * w
            else:
                focal = jnp.power(w, jnp.float32(gamma))
            loss = -focal * logpt                                     # (1, T)

        if needs_mask:
            # Ragged last block (partial edge block): zero lanes past the real
            # pixel count.  Garbage in the padded lanes stays confined to its
            # lane (softmax reduce is along the sublane/class axis) and is
            # dropped here, so it never reaches the wrapper sum.
            lane = jax.lax.broadcasted_iota(jnp.int32, (1, tile), 1)
            valid = (pl.program_id(1) * tile + lane) < hw_true
            loss = jnp.where(valid, loss, 0.0)

        out_ref[...] = loss[None]                                     # (1, 1, T)

    return focal_loss_kernel


def _pick_tile(hw: int, n_classes: int, itemsize: int, max_tile: int):
    """Pick a lane-dense pixel-tile size and whether a ragged-edge mask is needed."""
    # Per-pixel (per-lane) VMEM cost: double-buffered logits + targets +
    # output blocks, plus ~5 f32 (C, T) intermediates (cast, exp, selects /
    # spills) and a few (1, T) row temps.
    bytes_per_pixel = (2 * n_classes * itemsize   # logits, double buffered
                       + 2 * 4                    # int32 targets, double buf.
                       + 2 * 4                    # f32 output block, double buf.
                       + 5 * n_classes * 4        # f32 (C, T) intermediates
                       + 6 * 4)                   # (1, T) row temps
    budget = 12 * 1024 * 1024                     # safe on v5e / v6e / v7x
    cap = max(128, _round_down(budget // bytes_per_pixel, 128))
    cap = min(cap, max(128, _round_down(int(max_tile), 128)))

    if hw <= cap:
        return hw, False                          # whole image in one tile
    # Prefer a 128-multiple tile that divides HW (no padding, no masking).
    for cand in range(cap, 127, -128):
        if hw % cand == 0:
            return cand, False
    # No such divisor: ragged last block, handled with the in-kernel lane
    # mask instead of a wrapper jnp.pad of the full logits tensor.
    return cap, True


def focal_loss_pallas(x, target, alpha=None, gamma=2.0, size_average=True,
                      max_tile=65536):
    """Focal loss matching FocalLoss_1.forward.

    x:      (N, C, *spatial) or (R, C) float logits (any float dtype)
    target: (N, *spatial) or (R,) int class indices
    alpha:  None, scalar (-> [alpha, 1-alpha]) or per-class weights of len C
    """
    if x.ndim > 2:
        N, C = x.shape[0], x.shape[1]
        x3 = x.reshape(N, C, -1)                  # free reshape, no transpose
        t3 = target.reshape(N, 1, -1).astype(jnp.int32)
    else:
        # TODO(synk): the rare 2-D (R, C) path materializes a full HBM
        # transpose; add a classes-on-lanes kernel variant if it becomes hot.
        N, C = 1, x.shape[1]
        x3 = jnp.swapaxes(x, 0, 1)[None]          # (1, C, R)
        t3 = target.reshape(1, 1, -1).astype(jnp.int32)
    HW = x3.shape[2]
    R = N * HW                                    # real element count for mean

    if alpha is None:
        alpha_vec = jnp.ones((C,), jnp.float32)
    elif isinstance(alpha, (float, int)):
        alpha_vec = jnp.array([float(alpha), 1.0 - float(alpha)], jnp.float32)
    else:
        alpha_vec = jnp.asarray(alpha, jnp.float32).reshape(-1)
    a2 = alpha_vec.reshape(C, 1)

    itemsize = jnp.dtype(x3.dtype).itemsize
    T, needs_mask = _pick_tile(HW, C, itemsize, max_tile)
    num_tiles = -(-HW // T)                       # cdiv

    kernel = _make_focal_kernel(gamma, C, T, HW, needs_mask)

    # Per-step footprint is <= ~12 MiB by construction; 32 MiB scoped VMEM is
    # within physical VMEM on all of v5e / v6e / v7x.
    vmem_limit = 32 * 1024 * 1024

    partial = pl.pallas_call(
        kernel,
        out_shape=jax.ShapeDtypeStruct((N, num_tiles, T), jnp.float32),
        grid_spec=pltpu.PrefetchScalarGridSpec(
            num_scalar_prefetch=0,
            grid=(N, num_tiles),
            in_specs=[
                pl.BlockSpec((1, C, T), lambda n, j: (n, 0, j)),   # logits
                pl.BlockSpec((1, 1, T), lambda n, j: (n, 0, j)),   # targets
                pl.BlockSpec((C, 1), lambda n, j: (0, 0)),         # alpha
            ],
            out_specs=pl.BlockSpec((1, 1, T), lambda n, j: (n, j, 0)),
        ),
        compiler_params=pltpu.CompilerParams(
            dimension_semantics=("parallel", "parallel"),
            vmem_limit_bytes=vmem_limit),
    )(x3, t3, a2)

    total = jnp.sum(partial)
    if size_average:
        total = total / R
    return total


def focal_loss_ref(x, target, alpha, gamma=2.0, size_average=True):
    """Pure-JAX reference mirroring the PyTorch forward."""
    if x.ndim > 2:
        N, C = x.shape[0], x.shape[1]
        x2 = x.reshape(N, C, -1).transpose(0, 2, 1).reshape(-1, C)
    else:
        x2 = x
    t = target.reshape(-1).astype(jnp.int32)
    logsm = jax.nn.log_softmax(x2.astype(jnp.float32), axis=1)
    logpt = jnp.take_along_axis(logsm, t[:, None], axis=1)[:, 0]
    pt = jnp.exp(logpt)
    if alpha is not None:
        if isinstance(alpha, (float, int)):
            avec = jnp.array([float(alpha), 1.0 - float(alpha)], jnp.float32)
        else:
            avec = jnp.asarray(alpha, jnp.float32).reshape(-1)
        logpt = logpt * avec[t]
    loss = -1.0 * (1.0 - pt) ** gamma * logpt
    return loss.mean() if size_average else loss.sum()


if __name__ == "__main__":
    key = jax.random.PRNGKey(0)
    kx, kt = jax.random.split(key)

    # Shapes implied by the module's segmentation use (NCHW logits).
    N, C, H, W = 2, 4, 16, 16
    x = jax.random.normal(kx, (N, C, H, W), dtype=jnp.float32)
    target = jax.random.randint(kt, (N, H, W), 0, C, dtype=jnp.int32)
    alpha = [0.1, 0.2, 0.3, 0.4]          # list-alpha case of the module
    gamma = 2.0

    out = focal_loss_pallas(x, target, alpha, gamma=gamma, size_average=True)
    out = jax.block_until_ready(out)
    ref = focal_loss_ref(x, target, alpha, gamma=gamma, size_average=True)
    np.testing.assert_allclose(np.asarray(out), np.asarray(ref),
                               rtol=1e-5, atol=1e-6)

    # Ragged-edge path: H*W not a multiple of the (forced-small) tile, so the
    # last block is partial and the in-kernel lane mask must contain the
    # garbage lanes (validates the no-jnp.pad path).
    kx2, kt2 = jax.random.split(jax.random.PRNGKey(1))
    x2 = jax.random.normal(kx2, (1, 3, 20, 20), dtype=jnp.float32)
    t2 = jax.random.randint(kt2, (1, 20, 20), 0, 3, dtype=jnp.int32)
    a_list2 = [0.2, 0.3, 0.5]
    out2 = focal_loss_pallas(x2, t2, a_list2, gamma=2.0, size_average=False,
                             max_tile=128)
    out2 = jax.block_until_ready(out2)
    ref2 = focal_loss_ref(x2, t2, a_list2, gamma=2.0, size_average=False)
    np.testing.assert_allclose(np.asarray(out2), np.asarray(ref2),
                               rtol=1e-5, atol=1e-5)

    # TODO(synk): the module's debug print('input', ...)/print('target', ...)
    # side effect is intentionally not reproduced.
    print("KERNEL_OK")
</pallas_src>

<mosaic_0001>
module attributes {stable_mosaic.version = 11 : i64} {
  func.func @focal_loss_kernel(%arg0: i32, %arg1: i32, %arg2: memref<1x4x256xf32, #tpu.memory_space<vmem>>, %arg3: memref<1x1x256xi32, #tpu.memory_space<vmem>>, %arg4: memref<4x1xf32, #tpu.memory_space<vmem>>, %arg5: memref<1x1x256xf32, #tpu.memory_space<vmem>>) attributes {dimension_semantics = [#tpu.dimension_semantics<parallel>, #tpu.dimension_semantics<parallel>], iteration_bounds = array<i64: 2, 1>, scalar_prefetch = 0 : i64, scratch_operands = 0 : i64, tpu.core_type = #tpu.core_type<tc>, window_params = [{transform_indices = @transform_0, window_bounds = array<i64: 1, 4, 256>}, {transform_indices = @transform_1, window_bounds = array<i64: 1, 1, 256>}, {pipeline_mode = #tpu.pipeline_mode<synchronous>, transform_indices = @transform_2, window_bounds = array<i64: 4, 1>}, {transform_indices = @transform_3, window_bounds = array<i64: 1, 1, 256>}]} {
    %c0 = arith.constant 0 : index
    %c0_0 = arith.constant 0 : index
    %c0_1 = arith.constant 0 : index
    %0 = vector.load %arg2[%c0, %c0_0, %c0_1] : memref<1x4x256xf32, #tpu.memory_space<vmem>>, vector<1x4x256xf32>
    %1 = vector.shape_cast %0 : vector<1x4x256xf32> to vector<4x256xf32>
    %c0_2 = arith.constant 0 : index
    %c0_3 = arith.constant 0 : index
    %c0_4 = arith.constant 0 : index
    %2 = vector.load %arg3[%c0_2, %c0_3, %c0_4] : memref<1x1x256xi32, #tpu.memory_space<vmem>>, vector<1x1x256xi32>
    %3 = vector.shape_cast %2 : vector<1x1x256xi32> to vector<1x256xi32>
    %c0_5 = arith.constant 0 : index
    %c0_6 = arith.constant 0 : index
    %4 = vector.load %arg4[%c0_5, %c0_6] : memref<4x1xf32, #tpu.memory_space<vmem>>, vector<4x1xf32>
    %cst = arith.constant dense<0xFF800000> : vector<256xf32>
    %5 = vector.multi_reduction <maximumf>, %1, %cst [0] : vector<4x256xf32> to vector<256xf32>
    %6 = vector.shape_cast %5 : vector<256xf32> to vector<1x256xf32>
    %7 = vector.broadcast %6 : vector<1x256xf32> to vector<4x256xf32>
    %8 = arith.subf %1, %7 : vector<4x256xf32>
    %9 = math.exp %8 : vector<4x256xf32>
    %cst_7 = arith.constant dense<0.000000e+00> : vector<256xf32>
    %10 = vector.multi_reduction <add>, %9, %cst_7 [0] : vector<4x256xf32> to vector<256xf32>
    %11 = vector.shape_cast %10 : vector<256xf32> to vector<1x256xf32>
    %12 = math.log %11 : vector<1x256xf32>
    %13 = tpu.iota {dimensions = array<i32: 0>} : vector<4x256xi32>
    %14 = vector.broadcast %3 : vector<1x256xi32> to vector<4x256xi32>
    %15 = arith.cmpi eq, %13, %14 : vector<4x256xi32>
    %cst_8 = arith.constant 0.000000e+00 : f32
    %16 = vector.broadcast %cst_8 : f32 to vector<4x256xf32>
    %17 = arith.select %15, %8, %16 : vector<4x256xi1>, vector<4x256xf32>
    %cst_9 = arith.constant dense<0.000000e+00> : vector<256xf32>
    %18 = vector.multi_reduction <add>, %17, %cst_9 [0] : vector<4x256xf32> to vector<256xf32>
    %19 = vector.shape_cast %18 : vector<256xf32> to vector<1x256xf32>
    %20 = arith.subf %19, %12 : vector<1x256xf32>
    %21 = math.exp %20 : vector<1x256xf32>
    %cst_10 = arith.constant 0.000000e+00 : f32
    %22 = vector.shape_cast %4 : vector<4x1xf32> to vector<4x1xf32>
    %23 = vector.broadcast %22 : vector<4x1xf32> to vector<4x256xf32>
    %24 = vector.broadcast %cst_10 : f32 to vector<4x256xf32>
    %25 = arith.select %15, %23, %24 : vector<4x256xi1>, vector<4x256xf32>
    %cst_11 = arith.constant dense<0.000000e+00> : vector<256xf32>
    %26 = vector.multi_reduction <add>, %25, %cst_11 [0] : vector<4x256xf32> to vector<256xf32>
    %27 = vector.shape_cast %26 : vector<256xf32> to vector<1x256xf32>
    %28 = arith.mulf %20, %27 : vector<1x256xf32>
    %cst_12 = arith.constant 1.000000e+00 : f32
    %29 = vector.broadcast %cst_12 : f32 to vector<1x256xf32>
    %30 = arith.subf %29, %21 : vector<1x256xf32>
    %31 = arith.mulf %30, %30 : vector<1x256xf32>
    %cst_13 = arith.constant 0.000000e+00 : f32
    %32 = vector.broadcast %cst_13 : f32 to vector<1x256xf32>
    %33 = arith.subf %32, %31 : vector<1x256xf32>
    %34 = arith.mulf %33, %28 : vector<1x256xf32>
    %35 = vector.shape_cast %34 : vector<1x256xf32> to vector<1x1x256xf32>
    %c0_14 = arith.constant 0 : index
    %c0_15 = arith.constant 0 : index
    %c0_16 = arith.constant 0 : index
    %36 = vector.load %arg5[%c0_14, %c0_15, %c0_16] : memref<1x1x256xf32, #tpu.memory_space<vmem>>, vector<1x1x256xf32>
    tpu.vector_store %arg5[%c0_14, %c0_15, %c0_16], %35 {strides = array<i32>} : memref<1x1x256xf32, #tpu.memory_space<vmem>>, vector<1x1x256xf32>,
    return
  }
  func.func @transform_0(%arg0: i32, %arg1: i32) -> (i32, i32, i32) {
    %c0_i32 = arith.constant 0 : i32
    %c0_i32_0 = arith.constant 0 : i32
    return %arg0, %c0_i32, %arg1 : i32, i32, i32
  }
  func.func @transform_1(%arg0: i32, %arg1: i32) -> (i32, i32, i32) {
    %c0_i32 = arith.constant 0 : i32
    %c0_i32_0 = arith.constant 0 : i32
    return %arg0, %c0_i32, %arg1 : i32, i32, i32
  }
  func.func @transform_2(%arg0: i32, %arg1: i32) -> (i32, i32) {
    %c0_i32 = arith.constant 0 : i32
    %c0_i32_0 = arith.constant 0 : i32
    %c0_i32_1 = arith.constant 0 : i32
    return %c0_i32, %c0_i32_0 : i32, i32
  }
  func.func @transform_3(%arg0: i32, %arg1: i32) -> (i32, i32, i32) {
    %c0_i32 = arith.constant 0 : i32
    %c0_i32_0 = arith.constant 0 : i32
    return %arg0, %arg1, %c0_i32 : i32, i32, i32
  }
}

</mosaic_0001>

<bundles_post_ra>
// kernel: tpu_custom_call.1
= control target key start
LH: loop header
LB: loop body
LE: loop exit
PB: predicated region body
PF: predicated region fallthrough
CT: control target
= control target key end

     0   :  { %8 = vsyncpa [#allocation3], 0  ;;  %s870_s0 = inlined_call_operand.hbm [shape: f32[2,4,256], index: 0, kind: input, shape index: {}]   ;;  %s871_s1 = inlined_call_operand.vmem [shape: s32[2,1,256], index: 1, kind: input, shape index: {}]   ;;  %s872_s2 = inlined_call_operand.vmem [shape: f32[4,1], index: 2, kind: input, shape index: {}]   ;;  %s873_s3 = inlined_call_operand.hbm [shape: f32[2,1,256], index: 3, kind: output, shape index: {}]  }
   0x1   :  { %10 = vsyncpa [#allocation3 + $0x1], 0 }
   0x2   :  { %11 = vsyncpa [#allocation4], 0 }
   0x3   :  { %13 = vsyncpa [#allocation4 + $0x1], 0  ;;  %s714_s12 = smov 0   ;;  %s716_s13 = smov 0  }
   0x4   :  { %s718_s14 = smov 0   ;;  %s720_s15 = smov 0  }
   0x5   :  { %s722_s16 = smov 0   ;;  %s724_s17 = smov 0  }
   0x6 LB: > { %s489_s18 = sadd.s32 4294967295, %s691_s17   ;;  %s490_s19 = sadd.s32 4294967294, %s691_s17   ;;  %s691_s17 = sphi %s724_s17, %s19_s17   ;;  %s687_s16 = sphi %s722_s16, %s886_s16   ;;  %s683_s15 = sphi %s720_s15, %s885_s15   ;;  %s679_s14 = sphi %s718_s14, %s884_s14   ;;  %s675_s13 = sphi %s716_s13, %s883_s13   ;;  %s671_s12 = sphi %s714_s12, %s882_s12  }
   0x7   : > { %s31_s20 = sadd.s32 1, %s687_s16  ;;  %s40_s21 = sadd.s32 1, %s679_s14 }
   0x8   : > { %p33_p0 = scmp.ge.s32.totalorder %s31_s20, 2  ;;  %p47_p1 = scmp.ne.s32.totalorder %s679_s14, %s675_s13 }
   0x9   : > { %p48_p2 = scmp.eq.s32.totalorder %s691_s17, 0  ;;  %p53_p3 = scmp.ne.s32.totalorder %s675_s13, %s671_s12 }
   0xa   : > { %s888_s20 = smov (%p33_p0, %s31_s20), 0  ;;  %p54_p5 = scmp.eq.s32.totalorder %s489_s18, 0 }
   0xb   : > { %p755_p4 = por %p48_p2, %p47_p1  ;;  %s35_s23 = ssub.s32 %s687_s16, %s888_s20 }
   0xc   : > { %p128_p6 = scmp.eq.s32.totalorder %s489_s18, 1  ;;  %p38_p7 = scmp.eq.s32.totalorder %s35_s23, 0 }
   0xd   : > { %p761_p8 = por %p54_p5, %p53_p3  ;;  %p134_p10 = scmp.eq.s32.totalorder %s490_s19, 1 }
   0xe   : > { %p765_p9 = por %p128_p6, %p47_p1  ;;  %p492_p12 = scmp.ge.s32.totalorder %s691_s17, 2 }
   0xf   : > { %s770_s26 = scalar_select %p38_p7, %s679_s14, %s40_s21  }
  0x10   : > { %p772_p11 = por %p134_p10, %p53_p3  ;;  %p517_p13 = scmp.lt.s32.totalorder %s691_s17, 2 }
  0x11   : > { %s157_s28 = sand.u32 1, %s679_s14   ;;  %s504_s30 = sshll.u32 %s687_s16, 3 }
  0x12   : > { %s493_s29 = sshll.u32 %s157_s28, 3  ;;  %s168_s6 = scalar_lea.hbm %s870_s0, %s504_s30 }
  0x13   : > { %s161_s7 = scalar_lea.vmem [#allocation2], %s493_s29  ;;  %s170_s9 = sshll.u32 %s168_s6, 4  ;;  %s171_s9 = int_to_ptr.hbm [resolvable:$true] %s170_s9 }
  0x14   : > { %s172_s8 = sshll.u32 %s161_s7, 4  ;;  %p510_p0 = pnand %p517_p13, %p755_p4  ;;  %s173_s8 = int_to_ptr.vmem [resolvable:$true] %s172_s8 }
  0x15   : > { %p496_p1 = scmp.ge.s32.totalorder %s691_s17, 1  ;;  %p189_p2 = scmp.lt.s32.totalorder %s691_s17, 3 }
  0x16   : > { %s158_s10 = scalar_lea.sflag [#allocation3], %s157_s28 }
  0x17   : > { %512 = dma.hbm_to_vmem [thread:$0]  (!%p510_p0), %s171_s9, 128, %s173_s8, %s158_s10  }
  0x18   : > { %p190_p3 = pnand %p496_p1, %p189_p2 }
  0x19   : > { %s788_s11 = sand.u32 (!%p190_p3), 1, %s675_s13  }
  0x1a   : > { %193 = sbr.rel (%p190_p3) target bundleno = 173 (0xad), region = 32  ;;  %s497_s18 = sshll.u32 (!%p190_p3), %s788_s11, 3 }
  0x1b   : > { %s196_s19 = scalar_lea.sflag (!%p190_p3), [#allocation3], %s788_s11  ;;  %s199_s21 = scalar_lea.vmem (!%p190_p3), [#allocation2], %s497_s18 }
  0x1f   : > { %662 = dma.done.wait (%p761_p8), %s196_s19, 128  }
  0x20   : > { %664 = vsyncadd (%p761_p8), %s196_s19, 4294967168  ;;  %v693_v0 = vmov 0   ;;  %v243_v1 = vld [vmem:[%s872_s2] sm:$0xf]  ;;  %v241_v2 = vld [vmem:[%s199_s21] sm:$0xff]  ;;  %vm250_vm0 = vcmask 1043456   ;;  %v297_v26 = vlaneseq }
  0x21   : > { %568 = vset.pattern.permute.xlu0 %v693_v0  ;;  %245 = vst [vmem:[#allocation1] ss:$2 sm:$0xff] %v241_v2  ;;  %p233_p4 = scmp.lt.s32.totalorder %s683_s15, 1  ;;  %s498_s5 = sshll.u32 %s788_s11, 1  ;;  %vm365_vm3 = vcmask 1040384  }
  0x22   : > { %333 = vperm.xlu0 %568, %v243_v1   ;;  %v298_v30 = vshrl.u32 %v297_v26, 7  ;;  %s501_s6 = sshll.u32 %s683_s15, 1  ;;  %s230_s10 = scalar_lea.vmem [#allocation5], %s498_s5  ;;  %vm370_vm4 = vcmp.lt.s32.totalorder %v297_v26, 256 }
  0x23   : > { %s234_s24 = scalar_select %p233_p4, %s683_s15, 1 }
  0x24   : > { %s386_s9 = scalar_lea.hbm %s873_s3, %s501_s6  ;;  %s388_s18 = sshll.u32 %s230_s10, 4  ;;  %s389_s18 = int_to_ptr.vmem [resolvable:$true] %s388_s18 }
  0x25   : > { %s499_s28 = sshll.u32 %s234_s24, 1  ;;  %s390_s19 = sshll.u32 %s386_s9, 4  ;;  %s391_s19 = int_to_ptr.hbm [resolvable:$true] %s390_s19 }
  0x26   : > { %s239_s4 = scalar_lea.vmem %s871_s1, %s499_s28  ;;  %s374_s15 = scalar_lea.sflag [#allocation4], %s788_s11 }
  0x27   : > { %v242_v28 = vld [vmem:[%s239_s4] sm:$0x3]  ;;  %s623_s21 = sshra.s32 %s391_s19, 4  ;;  %s629_s28 = scalar_lea.hbm %s873_s3, 4  ;;  %s624_s21 = int_to_ptr.hbm [resolvable:$true] %s623_s21 }
  0x28   : > { %v247_v3 = vld.sshfl [vmem:[#allocation1 + $0x8] sm:$0xff pattern:$0x75316420]  ;;  %v246_v5 = vld.sshfl [vmem:[#allocation1] sm:$0xff pattern:$0x75316420]  ;;  %p630_p8 = scmp.lt.s32.totalorder %s624_s21, %s873_s3 }
  0x29   : > { %v258_v4 = vsel %vm250_vm0, %v247_v3, -inf  ;;  %v251_v7 = vsel %vm250_vm0, %v246_v5, -inf  ;;  %v300_v32 = vperm.slane %v242_v28, 1  ;;  %v299_v34 = vperm.slane %v242_v28, 0  ;;  %s625_s22 = scalar_lea.hbm %s624_s21, 2 }
  0x2a   : > { %v259_v6 = vrot.slane %v258_v4, 4  ;;  %v252_v8 = vrot.slane %v251_v7, 4  ;;  %p626_p5 = scmp.ne.s32.totalorder %s624_s21, %s625_s22  ;;  %p631_p10 = scmp.lt.s32.totalorder %s629_s28, %s625_s22 }
  0x2b   : > { %vm810_vm1 = vcmp.eq.s32.totalorder %v298_v30, %v300_v32  ;;  %vm814_vm2 = vcmp.eq.s32.totalorder %v298_v30, %v299_v34 }
  0x2c   : > { %v260_v9 = vmax.f32 %v258_v4, %v259_v6  ;;  %v253_v10 = vmax.f32 %v251_v7, %v252_v8  ;;  %p627_p6 = pnand %p626_p5, %p765_p9  ;;  %p632_p13 = por %p631_p10, %p630_p8 }
  0x2e   : > { %v261_v11 = vrot.slane %v260_v9, 2  ;;  %v254_v12 = vrot.slane %v253_v10, 2  ;;  %p628_p7 = pneg %p627_p6 }
  0x30   : > { %v262_v13 = vmax.f32 %v260_v9, %v261_v11  ;;  %v255_v14 = vmax.f32 %v253_v10, %v254_v12  ;;  %p633_p0 = pnand %p632_p13, %p628_p7 }
  0x32   : > { %v263_v15 = vrot.slane %v262_v13, 1  ;;  %v256_v16 = vrot.slane %v255_v14, 1 }
  0x34   : > { %v264_v17 = vmax.f32 %v262_v13, %v263_v15  ;;  %v257_v18 = vmax.f32 %v255_v14, %v256_v16 }
  0x36   : > { %v267_v19 = vrot.slane %v264_v17, 4 }
  0x38   : > { %v268_v20 = vsel %vm250_vm0, %v257_v18, %v267_v19 }
  0x39   : > { %v270_v21 = vsub.f32 %v241_v2, %v268_v20 }
  0x3b   : > { %v271_v22 = vmul.f32 1.442695, %v270_v21 }
  0x3d   : > { %569 = vpow2.f32 %v271_v22 }
  0x43   : > { %v570_v23 = vpop.eup %569 }
  0x44   : > { %274 = vst [vmem:[#allocation1] ss:$2 sm:$0xff] %v570_v23 }
  0x4b   : > { %v275_v24 = vld.sshfl [vmem:[#allocation1] sm:$0xff pattern:$0x75316420]  ;;  %v276_v25 = vld.sshfl [vmem:[#allocation1 + $0x8] sm:$0xff pattern:$0x75316420] }
  0x4c   : > { %304 = vst [vmem:[#allocation1] ss:$2 sm:$0xff] %v270_v21  ;;  %v286_v27 = vsel %vm250_vm0, %v276_v25, 0.0  ;;  %v279_v29 = vsel %vm250_vm0, %v275_v24, 0.0 }
  0x4d   : > { %v287_v31 = vrot.slane %v286_v27, 4  ;;  %v280_v33 = vrot.slane %v279_v29, 4 }
  0x4f   : > { %v288_v35 = vadd.f32 %v287_v31, %v286_v27  ;;  %v281_v38 = vadd.f32 %v280_v33, %v279_v29 }
  0x51   : > { %v289_v42 = vrot.slane %v288_v35, 2  ;;  %v282_v44 = vrot.slane %v281_v38, 2 }
  0x53   : > { %v306_v37 = vld.sshfl [vmem:[#allocation1 + $0x8] sm:$0xff pattern:$0x75316420]  ;;  %v305_v40 = vld.sshfl [vmem:[#allocation1] sm:$0xff pattern:$0x75316420]  ;;  %v290_v46 = vadd.f32 %v289_v42, %v288_v35  ;;  %v283_v49 = vadd.f32 %v282_v44, %v281_v38 }
  0x54   : > { %v310_v41 = vsel %vm810_vm1, %v306_v37, 0.0  ;;  %v309_v43 = vsel %vm814_vm2, %v305_v40, 0.0 }
  0x55   : > { %v318_v45 = vsel %vm250_vm0, %v310_v41, 0.0  ;;  %v311_v47 = vsel %vm250_vm0, %v309_v43, 0.0  ;;  %v291_v51 = vrot.slane %v290_v46, 1  ;;  %v284_v53 = vrot.slane %v283_v49, 1 }
  0x56   : > { %v319_v48 = vrot.slane %v318_v45, 4  ;;  %v312_v50 = vrot.slane %v311_v47, 4 }
  0x57   : > { %v292_v55 = vadd.f32 %v291_v51, %v290_v46  ;;  %v285_v57 = vadd.f32 %v284_v53, %v283_v49 }
  0x58   : > { %v320_v52 = vadd.f32 %v319_v48, %v318_v45  ;;  %v313_v54 = vadd.f32 %v312_v50, %v311_v47 }
  0x59   : > { %571 = vlog2.f32 %v292_v55 }
  0x5a   : > { %v321_v56 = vrot.slane %v320_v52, 2  ;;  %v314_v58 = vrot.slane %v313_v54, 2  ;;  %573 = vlog2.f32 %v285_v57 }
  0x5c   : > { %v322_v59 = vadd.f32 %v321_v56, %v320_v52  ;;  %v315_v60 = vadd.f32 %v314_v58, %v313_v54 }
  0x5e   : > { %v323_v61 = vrot.slane %v322_v59, 1  ;;  %v316_v63 = vrot.slane %v315_v60, 1 }
  0x5f   : > { %v572_v62 = vpop.eup %571 }
  0x60   : > { %v574_v0 = vpop.eup %573  ;;  %v296_v1 = vmul.f32 0.6931472, %v572_v62  ;;  %v324_v2 = vadd.f32 %v323_v61, %v322_v59  ;;  %v317_v4 = vadd.f32 %v316_v63, %v315_v60 }
  0x61   : > { %v294_v3 = vmul.f32 0.6931472, %v574_v0 }
  0x62   : > { %v326_v5 = vsub.f32 %v324_v2, %v296_v1 }
  0x63   : > { %v325_v6 = vsub.f32 %v317_v4, %v294_v3 }
  0x64   : > { %v329_v7 = vmul.f32 1.442695, %v326_v5 }
  0x65   : > { %v327_v8 = vmul.f32 1.442695, %v325_v6 }
  0x66   : > { %575 = vpow2.f32 %v329_v7 }
  0x67   : > { %577 = vpow2.f32 %v327_v8 }
  0x6c   : > { %v576_v12 = vpop.eup %575 }
  0x6d   : > { %v578_v17 = vpop.eup %577  ;;  %v355_v20 = vsub.f32 1.0, %v576_v12 }
  0x6e   : > { %v354_v23 = vsub.f32 1.0, %v578_v17 }
  0x6f   : > { %v357_v27 = vmul.f32 %v355_v20, %v355_v20 }
  0x70   : > { %v356_v30 = vmul.f32 %v354_v23, %v354_v23 }
  0x71   : > { %v359_v33 = vsub.f32 0.0, %v357_v27 }
  0x72   : > { %v358_v36 = vsub.f32 0.0, %v356_v30 }
  0x94   : > { %v334_v9 = vpop.permute.xlu0 %333 }
  0x95   : > { %v336_v10 = vsel %vm814_vm2, %v334_v9, 0.0  ;;  %v337_v11 = vsel %vm810_vm1, %v334_v9, 0.0 }
  0x96   : > { %v338_v13 = vsel %vm250_vm0, %v336_v10, 0.0  ;;  %v345_v14 = vsel %vm250_vm0, %v337_v11, 0.0 }
  0x97   : > { %v339_v15 = vrot.slane %v338_v13, 4  ;;  %v346_v16 = vrot.slane %v345_v14, 4 }
  0x99   : > { %v340_v18 = vadd.f32 %v339_v15, %v338_v13  ;;  %v347_v19 = vadd.f32 %v346_v16, %v345_v14 }
  0x9b   : > { %v341_v21 = vrot.slane %v340_v18, 2  ;;  %v348_v22 = vrot.slane %v347_v19, 2 }
  0x9d   : > { %v342_v24 = vadd.f32 %v341_v21, %v340_v18  ;;  %v349_v25 = vadd.f32 %v348_v22, %v347_v19 }
  0x9f   : > { %v343_v28 = vrot.slane %v342_v24, 1  ;;  %v350_v29 = vrot.slane %v349_v25, 1 }
  0xa1   : > { %v344_v31 = vadd.f32 %v343_v28, %v342_v24  ;;  %v351_v32 = vadd.f32 %v350_v29, %v349_v25 }
  0xa3   : > { %v352_v34 = vmul.f32 %v344_v31, %v325_v6  ;;  %v353_v35 = vmul.f32 %v351_v32, %v326_v5 }
  0xa5   : > { %v361_v37 = vmul.f32 %v359_v33, %v353_v35  ;;  %v360_v38 = vmul.f32 %v358_v36, %v352_v34 }
  0xa7   : > { %v364_v39 = vrot.slane %v361_v37, 7 }
  0xa9   : > { %v366_v40 = vsel %vm365_vm3, %v360_v38, %v364_v39 }
  0xaa   : > { %372 = vst.msk [vmem:[%s230_s10] sm:$0x3] %vm370_vm4, %v366_v40 }
  0xab   : > { %636 = shalt.err (!%p633_p0)
}
  0xac   : > { %507 = dma.vmem_to_hbm [thread:$0]  (%p765_p9), %s389_s18, 32, %s391_s19, %s374_s15  }
  0xad PF: > { %s402_s11 = sand.u32 1, %s671_s12   ;;  %p514_p1 = pnand %p492_p12, %p772_p11 }
  0xae   : > { %s403_s4 = scalar_lea.sflag [#allocation4], %s402_s11 }
  0xaf   : > { %p515_p2 = pneg %p514_p1 }
  0xb1   : > { %666 = dma.done.wait (%p515_p2), %s403_s4, 32  }
  0xb2   : > { %668 = vsyncadd (%p515_p2), %s403_s4, 4294967264  ;;  %s19_s17 = sadd.s32 1, %s691_s17   ;;  %s882_s12 = smov %s675_s13 }
  0xb3   : > { %p16_p3 = scmp.ge.s32.totalorder %s19_s17, 4   ;;  %s883_s13 = smov %s679_s14 }
  0xb4   : > { %s884_s14 = smov %s770_s26  ;;  %s885_s15 = smov %s687_s16 }
  0xb5   : > { %s886_s16 = smov %s888_s20  ;;  %18 = sbr.rel (!%p16_p3) target bundleno = 6 (0x6), region = 80 }
  0xba   :  { %409 = vsyncpa [#allocation3], 1 }
  0xbb   :  { %411 = vsyncpa [#allocation3 + $0x1], 1 }
  0xbc   :  { %412 = vsyncpa [#allocation4], 1 }
  0xbd   :  { %414 = vsyncpa [#allocation4 + $0x1], 1 }

</bundles_post_ra>
